<compile_context>
chip_gen: v7x
topology: tpu7x:2x2x1
jax: 0.10.0
libtpu: 0.0.40
codegen_flags: <defaults>
</compile_context>

<pallas_src>
import functools

import jax
import jax.numpy as jnp
from jax import lax
from jax.experimental import pallas as pl
from jax.experimental.pallas import tpu as pltpu

_LANE = 128  # in-kernel chunk width (one vreg of lanes)


def _round_up(v, m):
    return (v + m - 1) // m * m


def _embed_kernel(coef_ref, x_ref, out_ref, *, n_freqs, batch_major):
    """One batch tile.

    coef_ref : VMEM (N*C, 128) f32  per-row frequency, row k*C + j -> freq_bands[k]
                                    (pre-broadcast to chunk width; constant block,
                                     fetched once)
    x_ref    : VMEM (C, TB)         input tile, channels on sublanes, batch on lanes
    out_ref  : VMEM (TB, 2*N*C) if batch_major else (2*N*C, TB)
    """
    c, tb = x_ref.shape
    r = 2 * n_freqs * c                        # out_channels
    r_pad = _round_up(r, 8) if batch_major else r
    w = _LANE
    n_chunks = tb // w

    def body(i, carry):
        i0 = pl.multiple_of(i * w, w)
        # (C, 128) slice of the batch tile; everything below stays vreg-resident.
        xs = x_ref[:, pl.ds(i0, w)].astype(jnp.float32)
        # Sublane-tile the C channel rows N_freqs times (k-major: row k*C+j = x_j),
        # then one dense multiply applies freq_bands[k] to every row.
        xrep = jnp.concatenate([xs] * n_freqs, axis=0)               # (N*C, 128)
        args = xrep * coef_ref[...]                                  # (N*C, 128)
        s = jnp.sin(args)                                            # dense passes:
        co = jnp.cos(args)                                           # 1 transcendental
                                                                     # per output elem
        # Interleave per-frequency C-row groups into the final column order
        # row = k*2C + f*C + j  (f=0 -> sin, f=1 -> cos), i.e. exactly
        # cat([sin(f0 x), cos(f0 x), sin(f1 x), cos(f1 x), ...], -1).
        pieces = []
        for k in range(n_freqs):
            pieces.append(s[k * c:(k + 1) * c, :])
            pieces.append(co[k * c:(k + 1) * c, :])
        if r_pad > r:  # pad rows to a sublane multiple so the transpose is tidy
            pieces.append(jnp.zeros((r_pad - r, w), jnp.float32))
        plane = jnp.concatenate(pieces, axis=0)                      # (r_pad, 128)

        if batch_major:
            # In-kernel XLU transpose of the chunk -> batch-major store.  The whole
            # (TB, out_ch) block is later written back with one contiguous DMA, so
            # the output never takes an extra HBM round trip in the wrapper.
            out_ref[pl.ds(i0, w), :] = plane.T[:, :r].astype(out_ref.dtype)
        else:
            # Lane-dense store, rows already in final column order.
            out_ref[:, pl.ds(i0, w)] = plane.astype(out_ref.dtype)
        return carry

    lax.fori_loop(0, n_chunks, body, 0)


def _embed_pallas(x, freq_bands, *, block_b, out_dtype, batch_major, min_grid_steps):
    B, C = x.shape
    n_freqs = int(freq_bands.shape[0])
    r = 2 * n_freqs * C

    # Batch tile: as large as block_b allows (amortizes ~0.35us/step, bigger writeback
    # DMAs) but forced to >= min_grid_steps steps so the "parallel" grid axis can be
    # sharded across both v7x TensorCores.
    b_ceil = _round_up(B, _LANE)
    steps = max(min_grid_steps, pl.cdiv(b_ceil, block_b))
    tb = _round_up(pl.cdiv(b_ceil, steps), _LANE)
    grid = (pl.cdiv(B, tb),)

    # Feature-major input view (channels on sublanes, batch on lanes).  This is the
    # only wrapper-side pass and touches ~1/(2*N_freqs) of the output bytes.
    x_t = x.T                                                        # (C, B)
    # Per-row frequency, pre-broadcast to the chunk width (no in-kernel lane splat).
    coef = jnp.broadcast_to(
        jnp.repeat(freq_bands.astype(jnp.float32), C)[:, None],
        (n_freqs * C, _LANE))

    if batch_major:
        out_shape = jax.ShapeDtypeStruct((B, r), out_dtype)
        out_spec = pl.BlockSpec((tb, r), lambda i: (i, 0))
    else:
        out_shape = jax.ShapeDtypeStruct((r, B), out_dtype)
        out_spec = pl.BlockSpec((r, tb), lambda i: (0, i))

    cost = pl.CostEstimate(
        flops=2 * B * r,
        transcendentals=B * r,
        bytes_accessed=int(B * C * x.dtype.itemsize
                           + B * r * jnp.dtype(out_dtype).itemsize
                           + coef.size * 4))

    kernel = functools.partial(_embed_kernel, n_freqs=n_freqs,
                               batch_major=batch_major)
    return pl.pallas_call(
        kernel,
        out_shape=out_shape,
        grid=grid,
        in_specs=[pl.BlockSpec((n_freqs * C, _LANE), lambda i: (0, 0)),
                  pl.BlockSpec((C, tb), lambda i: (0, i))],
        out_specs=out_spec,
        compiler_params=pltpu.CompilerParams(
            dimension_semantics=("parallel",),
            vmem_limit_bytes=32 * 1024 * 1024),
        cost_estimate=cost,
    )(coef, x_t)


def positional_embedding(x, freq_bands, *, block_b=16384, out_dtype=None,
                         use_pallas=None, min_pallas_rows=512, min_grid_steps=2):
    """Drop-in equivalent of Embedding.forward(): x (B, C) -> (B, 2*N_freqs*C).

    out_dtype=jnp.bfloat16 is the recommended (opt-in) setting for v5e/v6e call
    sites: the kernel is HBM-write bound there and bf16 halves write traffic;
    compute stays f32, the cast happens at the store.
    """
    x = jnp.asarray(x)
    freq_bands = jnp.asarray(freq_bands, dtype=jnp.float32)
    B, _ = x.shape
    out_dtype = x.dtype if out_dtype is None else jnp.dtype(out_dtype)

    if use_pallas is None:
        use_pallas = B >= min_pallas_rows
    if not use_pallas:
        # Tiny batches: a standalone kernel launch is pure overhead; let XLA fuse it.
        return reference_embedding(x, freq_bands).astype(out_dtype)

    return _embed_pallas(x, freq_bands, block_b=block_b, out_dtype=out_dtype,
                         batch_major=True, min_grid_steps=min_grid_steps)


def positional_embedding_feature_major(x, freq_bands, *, block_b=16384,
                                       out_dtype=None, min_grid_steps=2):
    """Preferred consumer layout: (2*N_freqs*C, B), lane-dense stores, no transpose.

    Row order is the final column order of forward() (row = k*2C + f*C + j), so
    `result.T` equals the batch-major output.  Feeding this directly into the next
    matmul (K-major LHS) skips even the in-kernel per-tile transpose.
    """
    x = jnp.asarray(x)
    freq_bands = jnp.asarray(freq_bands, dtype=jnp.float32)
    out_dtype = x.dtype if out_dtype is None else jnp.dtype(out_dtype)
    return _embed_pallas(x, freq_bands, block_b=block_b, out_dtype=out_dtype,
                         batch_major=False, min_grid_steps=min_grid_steps)


def make_freq_bands(n_freqs, logscale=True):
    """Deterministic 'parameter' init, mirroring Embedding.__init__."""
    if logscale:
        return (2.0 ** jnp.linspace(0.0, n_freqs - 1, n_freqs)).astype(jnp.float32)
    return jnp.linspace(1.0, 2.0 ** (n_freqs - 1), n_freqs).astype(jnp.float32)


def reference_embedding(x, freq_bands):
    """Pure-JAX reference matching the PyTorch forward() exactly."""
    outs = []
    for k in range(int(freq_bands.shape[0])):
        f = freq_bands[k]
        outs.append(jnp.sin(f * x))
        outs.append(jnp.cos(f * x))
    return jnp.concatenate(outs, axis=-1)


if __name__ == "__main__":
    key = jax.random.PRNGKey(0)
    k1, k2 = jax.random.split(key)

    # Case 1: direction-style embedding (N_freqs=4, out_ch=24).  B is not a multiple
    # of the tile (ragged tail) and block_b is small so the grid has several
    # pipelined steps.
    B1, C1, NF1 = 2000, 3, 4
    x1 = jax.random.normal(k1, (B1, C1), dtype=jnp.float32)
    fb1 = make_freq_bands(NF1, logscale=True)
    out1 = jax.block_until_ready(positional_embedding(x1, fb1, block_b=512))
    ref1 = reference_embedding(x1, fb1)
    assert out1.shape == (B1, 2 * NF1 * C1), out1.shape
    assert jnp.allclose(out1, ref1, atol=1e-5, rtol=1e-5), "case1 mismatch vs reference"

    # Case 1b: lane-dense feature-major output (preferred consumer layout).
    fm1 = jax.block_until_ready(positional_embedding_feature_major(x1, fb1))
    assert fm1.shape == (2 * NF1 * C1, B1), fm1.shape
    assert jnp.allclose(fm1.T, ref1, atol=1e-5, rtol=1e-5), "case1 feature-major mismatch"

    # Case 1c: bf16 output (opt-in; recommended for v5e/v6e call sites).
    out1b = jax.block_until_ready(
        positional_embedding(x1, fb1, out_dtype=jnp.bfloat16))
    assert out1b.dtype == jnp.bfloat16
    assert jnp.allclose(out1b.astype(jnp.float32), ref1, atol=2e-2), "case1 bf16 mismatch"

    # Case 2: NeRF xyz-style embedding (N_freqs=10, out_ch=60), coords in [-1, 1],
    # default (large) block_b.  Arguments reach 2^9*|x|, so allow a few ULPs of the
    # f32 argument when comparing two independent sin/cos lowerings.
    B2, C2, NF2 = 1024, 3, 10
    x2 = jax.random.uniform(k2, (B2, C2), dtype=jnp.float32, minval=-1.0, maxval=1.0)
    fb2 = make_freq_bands(NF2, logscale=True)
    out2 = jax.block_until_ready(positional_embedding(x2, fb2))
    ref2 = reference_embedding(x2, fb2)
    assert out2.shape == (B2, 2 * NF2 * C2), out2.shape
    assert jnp.allclose(out2, ref2, atol=1e-4, rtol=1e-5), "case2 mismatch vs reference"

    print("KERNEL_OK")
</pallas_src>

<mosaic_0001>
module attributes {stable_mosaic.version = 11 : i64} {
  func.func @_embed_kernel(%arg0: i32, %arg1: memref<12x128xf32, #tpu.memory_space<vmem>>, %arg2: memref<3x512xf32, #tpu.memory_space<vmem>>, %arg3: memref<512x24xf32, #tpu.memory_space<vmem>>) attributes {dimension_semantics = [#tpu.dimension_semantics<parallel>], iteration_bounds = array<i64: 4>, scalar_prefetch = 0 : i64, scratch_operands = 0 : i64, tpu.core_type = #tpu.core_type<tc>, window_params = [{pipeline_mode = #tpu.pipeline_mode<synchronous>, transform_indices = @transform_0, window_bounds = array<i64: 12, 128>}, {transform_indices = @transform_1, window_bounds = array<i64: 3, 512>}, {transform_indices = @transform_2, window_bounds = array<i64: 512, 24>}]} {
    %c0_i32 = arith.constant 0 : i32
    %c4_i32 = arith.constant 4 : i32
    %0 = arith.addi %c0_i32, %c4_i32 : i32
    %c1_i32 = arith.constant 1 : i32
    scf.for %arg4 = %c0_i32 to %0 step %c1_i32  : i32 {
      %c128_i32 = arith.constant 128 : i32
      %1 = arith.muli %arg4, %c128_i32 : i32
      %2 = tpu.assume_multiple %1, 128 : i32
      %c0 = arith.constant 0 : index
      %3 = arith.index_cast %2 : i32 to index
      %4 = vector.load %arg2[%c0, %3] : memref<3x512xf32, #tpu.memory_space<vmem>>, vector<3x128xf32>
      %5 = tpu.concatenate %4, %4, %4, %4 in 0 : vector<3x128xf32>, vector<3x128xf32>, vector<3x128xf32>, vector<3x128xf32> -> vector<12x128xf32>
      %c0_1 = arith.constant 0 : index
      %c0_2 = arith.constant 0 : index
      %6 = vector.load %arg1[%c0_1, %c0_2] : memref<12x128xf32, #tpu.memory_space<vmem>>, vector<12x128xf32>
      %7 = arith.mulf %5, %6 : vector<12x128xf32>
      %8 = math.sin %7 : vector<12x128xf32>
      %9 = math.cos %7 : vector<12x128xf32>
      %10 = vector.extract_strided_slice %8 {offsets = [0, 0], sizes = [3, 128], strides = [1, 1]} : vector<12x128xf32> to vector<3x128xf32>
      %11 = vector.extract_strided_slice %9 {offsets = [0, 0], sizes = [3, 128], strides = [1, 1]} : vector<12x128xf32> to vector<3x128xf32>
      %12 = vector.extract_strided_slice %8 {offsets = [3, 0], sizes = [3, 128], strides = [1, 1]} : vector<12x128xf32> to vector<3x128xf32>
      %13 = vector.extract_strided_slice %9 {offsets = [3, 0], sizes = [3, 128], strides = [1, 1]} : vector<12x128xf32> to vector<3x128xf32>
      %14 = vector.extract_strided_slice %8 {offsets = [6, 0], sizes = [3, 128], strides = [1, 1]} : vector<12x128xf32> to vector<3x128xf32>
      %15 = vector.extract_strided_slice %9 {offsets = [6, 0], sizes = [3, 128], strides = [1, 1]} : vector<12x128xf32> to vector<3x128xf32>
      %16 = vector.extract_strided_slice %8 {offsets = [9, 0], sizes = [3, 128], strides = [1, 1]} : vector<12x128xf32> to vector<3x128xf32>
      %17 = vector.extract_strided_slice %9 {offsets = [9, 0], sizes = [3, 128], strides = [1, 1]} : vector<12x128xf32> to vector<3x128xf32>
      %18 = tpu.concatenate %10, %11, %12, %13, %14, %15, %16, %17 in 0 : vector<3x128xf32>, vector<3x128xf32>, vector<3x128xf32>, vector<3x128xf32>, vector<3x128xf32>, vector<3x128xf32>, vector<3x128xf32>, vector<3x128xf32> -> vector<24x128xf32>
      %19 = tpu.transpose %18, [1, 0] : vector<24x128xf32> -> vector<128x24xf32>
      %20 = arith.index_cast %2 : i32 to index
      %c0_3 = arith.constant 0 : index
      %21 = vector.load %arg3[%20, %c0_3] : memref<512x24xf32, #tpu.memory_space<vmem>>, vector<128x24xf32>
      tpu.vector_store %arg3[%20, %c0_3], %19 {strides = array<i32>} : memref<512x24xf32, #tpu.memory_space<vmem>>, vector<128x24xf32>,
    }
    %c4_i32_0 = arith.constant 4 : i32
    return
  }
  func.func @transform_0(%arg0: i32) -> (i32, i32) {
    %c0_i32 = arith.constant 0 : i32
    %c0_i32_0 = arith.constant 0 : i32
    %c0_i32_1 = arith.constant 0 : i32
    return %c0_i32, %c0_i32_0 : i32, i32
  }
  func.func @transform_1(%arg0: i32) -> (i32, i32) {
    %c0_i32 = arith.constant 0 : i32
    %c0_i32_0 = arith.constant 0 : i32
    return %c0_i32, %arg0 : i32, i32
  }
  func.func @transform_2(%arg0: i32) -> (i32, i32) {
    %c0_i32 = arith.constant 0 : i32
    %c0_i32_0 = arith.constant 0 : i32
    return %arg0, %c0_i32 : i32, i32
  }
}

</mosaic_0001>

<bundles_post_ra>
// kernel: tpu_custom_call.1
= control target key start
LH: loop header
LB: loop body
LE: loop exit
PB: predicated region body
PF: predicated region fallthrough
CT: control target
= control target key end

     0   :  { %7 = vsyncpa [#allocation3], 0  ;;  %s2070_s0 = inlined_call_operand.hbm [shape: f32[12,128], index: 0, kind: input, shape index: {}]   ;;  %s2071_s1 = inlined_call_operand.hbm [shape: f32[3,2000], index: 1, kind: input, shape index: {}]   ;;  %s2072_s2 = inlined_call_operand.vmem [shape: f32[2000,24], index: 2, kind: output, shape index: {}]  }
   0x1   :  { %8 = vsyncpa [#allocation5], 0 }
   0x2   :  { %10 = vsyncpa [#allocation5 + $0x1], 0  ;;  %s1595_s9 = smov 0   ;;  %s1597_s10 = smov 0  }
   0x3   :  { %s1599_s11 = smov 0   ;;  %s1601_s12 = smov 0  }
   0x4 LB: > { %s1614_s13 = sadd.s32 4294967295, %s1532_s12   ;;  %p57_p0 = scmp.ne.s32.totalorder %s1524_s10, %s1520_s9  ;;  %s1532_s12 = sphi %s1601_s12, %s2094_s12   ;;  %s1528_s11 = sphi %s1599_s11, %s2093_s11   ;;  %s1524_s10 = sphi %s1597_s10, %s2092_s10   ;;  %s1520_s9 = sphi %s1595_s9, %s2091_s9  }
   0x5   : > { %p2073_p1 = scmp.eq.s32.totalorder %s1614_s13, 0  ;;  %p1204_p3 = scmp.ge.s32.totalorder %s1532_s12, 1 }
   0x6   : > { %p94_p4 = scmp.lt.s32.totalorder %s1532_s12, 5  ;;  %s1570_s16 = smov [#allocation2]  }
   0x7   : > { %p1623_p5 = por %p2073_p1, %p57_p0  ;;  %s106_s17 = sshll.u32 %s1570_s16, 4  ;;  %s107_s17 = int_to_ptr.vmem [resolvable:$true] %s106_s17 }
   0x8   : > { %p1627_p6 = pnand %p1204_p3, %p94_p4  ;;  %s1640_s19 = sadd.s32 1, %s1532_s12  }
   0x9   : > { %s2076_s14 = scalar_select %p1623_p5, 1, 0 }
   0xa   : > { %s2077_s15 = scalar_select %p1627_p6, 1, 0 }
   0xb   : > { %p1267_p7 = pneg %p1627_p6  ;;  %s41_s20 = ssub.s32 %s1532_s12, %s1640_s19 }
   0xc   : > { %s1400_s23 = scalar_lea.hbm %s2070_s0, 256 }
   0xd   : > { %p1635_p8 = pnand %p1267_p7, %p2073_p1  ;;  %p1401_p9 = scmp.ne.s32.totalorder %s2070_s0, %s1400_s23 }
   0xe   : > { %p1407_p13 = scmp.lt.u32.totalorder %s1400_s23, %s2070_s0 }
   0xf   : > { %p1402_p10 = pneg %p1635_p8 }
  0x11   : > { %p1403_p11 = pnand %p1402_p10, %p1401_p9 }
  0x13   : > { %p1404_p12 = pneg %p1403_p11 }
  0x15   : > { %p1409_p0 = pnand %p1407_p13, %p1404_p12 }
  0x17   : > { %1412 = shalt.err (!%p1409_p0)
}
  0x18   : > { %s1413_s28 = scalar_lea.vmem %s107_s17, 256  ;;  %p1421_p1 = scmp.lt.s32.totalorder %s107_s17, %s107_s17 }
  0x19   : > { %p1414_p3 = scmp.ne.s32.totalorder %s107_s17, %s1413_s28  ;;  %p1422_p2 = scmp.lt.s32.totalorder %s1413_s28, %s1413_s28 }
  0x1b   : > { %p1416_p4 = pnand %p1414_p3, %p1402_p10  ;;  %p1423_p5 = por %p1422_p2, %p1421_p1 }
  0x1d   : > { %p1417_p7 = pneg %p1416_p4 }
  0x1f   : > { %p1424_p6 = pnand %p1423_p5, %p1417_p7 }
  0x21   : > { %1427 = shalt.err (!%p1424_p6)
}
  0x22   : > { %s1571_s29 = smov 128   ;;  %s1572_s30 = smov 8  }
  0x23   : > { %1270 = dma.hbm_to_vmem [thread:$0]  (!%p1635_p8), %s2070_s0, 256, %s107_s17, [#allocation3], %s1571_s29, %s1571_s29, %s1572_s30  }
  0x24   : > { %p42_p1 = scmp.eq.s32.totalorder %s41_s20, 0  ;;  %s44_s5 = sadd.s32 1, %s1528_s11 }
  0x25   : > { %p51_p2 = scmp.ne.s32.totalorder %s1528_s11, %s1524_s10  ;;  %p52_p5 = scmp.eq.s32.totalorder %s1532_s12, 0 }
  0x26   : > { %s1665_s6 = scalar_select %p42_p1, %s1528_s11, %s44_s5  }
  0x27   : > { %p53_p6 = por %p52_p5, %p51_p2  ;;  %p2079_p9 = scmp.eq.s32.totalorder %s1614_s13, 3 }
  0x28   : > { %p1276_p11 = scmp.lt.s32.totalorder %s1532_s12, 4  ;;  %s120_s8 = sand.u32 1, %s1528_s11  }
  0x29   : > { %p1669_p10 = por %p2079_p9, %p51_p2  ;;  %s1207_s9 = sshll.u32 %s120_s8, 4 }
  0x2a   : > { %s1249_s16 = sshll.u32 %s1532_s12, 8  ;;  %s124_s20 = scalar_lea.vmem [#allocation4], %s1207_s9 }
  0x2b   : > { %s1679_s17 = scalar_lea.hbm %s2071_s1, %s1249_s16  ;;  %s132_s22 = sshll.u32 %s124_s20, 4  ;;  %s1681_s22 = int_to_ptr.vmem [resolvable:$true] %s132_s22 }
  0x2c   : > { %p1683_p8 = pnand %p1276_p11, %p53_p6  ;;  %s121_s12 = scalar_lea.sflag [#allocation5], %s120_s8 }
  0x2d   : > { %s1428_s24 = scalar_lea.hbm %s1679_s17, 256  ;;  %s1433_s27 = scalar_lea.hbm %s2071_s1, 1024 }
  0x2e   : > { %p1429_p12 = scmp.ne.s32.totalorder %s1679_s17, %s1428_s24  ;;  %p1430_p13 = pneg %p1683_p8 }
  0x2f   : > { %p1434_p4 = scmp.lt.u32.totalorder %s1679_s17, %s2071_s1  ;;  %p1435_p7 = scmp.lt.u32.totalorder %s1433_s27, %s1428_s24 }
  0x30   : > { %p1431_p0 = pnand %p1430_p13, %p1429_p12  ;;  %p1437_p2 = scmp.lt.u32.totalorder %s1428_s24, %s1679_s17 }
  0x31   : > { %p1436_p1 = por %p1435_p7, %p1434_p4 }
  0x32   : > { %p1432_p3 = pneg %p1431_p0 }
  0x33   : > { %p1438_p5 = por %p1437_p2, %p1436_p1 }
  0x35   : > { %p1439_p6 = pnand %p1438_p5, %p1432_p3 }
  0x37   : > { %1442 = shalt.err (!%p1439_p6)
}
  0x38   : > { %s1443_s30 = scalar_lea.vmem %s1681_s22, 256  ;;  %s1573_s3 = smov [#allocation4]  }
  0x39   : > { %p1444_p9 = scmp.ne.s32.totalorder %s1681_s22, %s1443_s30  ;;  %s1448_s4 = sshll.u32 %s1573_s3, 4  ;;  %s1449_s4 = int_to_ptr.vmem [resolvable:$false] %s1448_s4 }
  0x3a   : > { %s1450_s5 = scalar_lea.vmem %s1449_s4, 512  ;;  %p1451_p0 = scmp.lt.s32.totalorder %s1681_s22, %s1449_s4 }
  0x3b   : > { %p1446_p11 = pnand %p1444_p9, %p1430_p13  ;;  %p1452_p4 = scmp.lt.s32.totalorder %s1450_s5, %s1443_s30 }
  0x3d   : > { %p1447_p12 = pneg %p1446_p11  ;;  %p1453_p7 = por %p1452_p4, %p1451_p0 }
  0x3f   : > { %p1454_p1 = pnand %p1453_p7, %p1447_p12 }
  0x41   : > { %1457 = shalt.err (!%p1454_p1)
}
  0x42   : > { %1274 = dma.hbm_to_vmem [thread:$0]  (!%p1683_p8), %s1679_s17, 256, %s1681_s22, %s121_s12  }
  0x43   : > { %p2082_p3 = scmp.ne.s32.totalorder %s2077_s15, 0 }
  0x44   : > { %p2083_p13 = scmp.eq.s32.totalorder (!%p2082_p3), %s1614_s13, 0 }
  0x45   : > { %141 = sbr.rel (%p2082_p3) target bundleno = 453 (0x1c5), region = 28 }
  0x4c   : > { %1511 = dma.done.wait (%p2083_p13), [#allocation3], 256   ;;  %p2084_p2 = pmov %p2083_p13 }
  0x4d   : > { %s147_s8 = sand.u32 1, %s1524_s10   ;;  %p2085_p5 = scmp.ne.s32.totalorder %s2076_s14, 0 }
  0x4e   : > { %1513 = vsyncadd (%p2084_p2), [#allocation3], 4294967040  ;;  %s1212_s9 = sshll.u32 %s147_s8, 4  ;;  %s148_s16 = scalar_lea.sflag [#allocation5], %s147_s8 }
  0x4f   : > { %s1719_s18 = scalar_lea.vmem [#allocation4], %s1212_s9 }
  0x50   : > { %1515 = dma.done.wait (%p2085_p5), %s148_s16, 256  }
  0x51   : > { %1517 = vsyncadd (%p2085_p5), %s148_s16, 4294967040  ;;  %s1213_s15 = sshll.u32 %s147_s8, 9  ;;  %s1727_s17 = smov 0  }
  0x52   : > { %s1725_s21 = scalar_lea.vmem [#allocation6], %s1213_s15  }
  0x53 LB: >> { %s1214_s20 = sshll.u32 %s1536_s17, 7  ;;  %vm196_vm0 = vcmask 1042432   ;;  %vm200_vm1 = vcmask 1040384   ;;  %vm198_vm2 = vcmask 1045504   ;;  %v203_v4 = vld [vmem:[#allocation2 + $0x8] sm:$0xf]  ;;  %s1536_s17 = sphi %s1727_s17, %s182_s17  }
  0x54   : >> { %s184_s22 = sshra.s32 %s1214_s20, 7  ;;  %v202_v5 = vld [vmem:[#allocation2] sm:$0xff]  ;;  %v1574_v33 = vmov 683565275   ;;  %v1575_v35 = vmov 2475754826   ;;  %s1824_s14 = scalar_lea.vmem %s1725_s21, %s1214_s20 [#allocation6] }
  0x55   : >> { %s1215_s23 = sshll.u32 %s184_s22, 2  ;;  %v1576_v40 = vmov 2131351028   ;;  %v1577_v42 = vmov 2102212464   ;;  %s182_s17 = sadd.s32 1, %s1536_s17  }
  0x56   : >> { %s187_s12 = scalar_lea.vmem %s1719_s18, %s1215_s23 [#allocation4]  ;;  %v1578_v44 = vmov 920167782   ;;  %v1579_v52 = vmov 1326507024   ;;  %p179_p8 = scmp.ge.s32.totalorder %s182_s17, 4  }
  0x57   : >> { %v188_v0 = vld [vmem:[%s187_s12] sm:$0x7] }
  0x58   : >> { %v190_v1 = vrot.slane %v188_v0, 5  ;;  %v192_v2 = vrot.slane %v188_v0, 2  ;;  %v194_v3 = vrot.slane %v188_v0, 7 }
  0x5a   : >> { %v197_v6 = vsel %vm196_vm0, %v188_v0, %v190_v1  ;;  %v201_v7 = vsel %vm200_vm1, %v192_v2, %v194_v3 }
  0x5b   : >> { %v199_v8 = vsel %vm198_vm2, %v197_v6, %v192_v2  ;;  %v1739_v9 = vmul.f32 %v203_v4, %v201_v7 }
  0x5c   : >> { %v1741_v10 = vmul.f32 %v202_v5, %v199_v8 }
  0x5d   : >> { %v313_v11 = vand.u32 2139095040, %v1739_v9  ;;  %v310_v17 = vand.u32 2147483647, %v1739_v9 }
  0x5e   : >> { %v206_v12 = vand.u32 2147483647, %v1741_v10  ;;  %v209_v13 = vand.u32 2139095040, %v1741_v10 }
  0x5f   : >> { %v314_v14 = vshrl.u32 %v313_v11, 23  ;;  %v1751_v23 = vand.u32 8388607, %v310_v17 }
  0x60   : >> { %v210_v15 = vshrl.u32 %v209_v13, 23  ;;  %v213_v16 = vand.u32 8388607, %v206_v12 }
  0x61   : >> { %v1220_v18 = vadd.s32 4294967169, %v314_v14  ;;  %v318_v30 = vor.u32 8388608, %v1751_v23 }
  0x62   : >> { %v1216_v19 = vadd.s32 4294967169, %v210_v15  ;;  %v214_v21 = vor.u32 8388608, %v213_v16 }
  0x63   : >> { %v320_v20 = vadd.s32 1, %v1220_v18 }
  0x64   : >> { %v216_v22 = vadd.s32 1, %v1216_v19  ;;  %v1753_v29 = vshll.u32 %v214_v21, 8 }
  0x65   : >> { %vm321_vm3 = vcmp.gt.s32.totalorder %v320_v20, 0 }
  0x66   : >> { %vm217_vm4 = vcmp.gt.s32.totalorder %v216_v22, 0  ;;  %v322_v24 = vsel %vm321_vm3, %v320_v20, 0 }
  0x67   : >> { %v218_v25 = vsel %vm217_vm4, %v216_v22, 0  ;;  %v324_v26 = vand.u32 31, %v322_v24  ;;  %v1756_v31 = vshrl.u32 %v322_v24, 5  ;;  %vm208_vm4 = vcmp.lt.s32.totalorder %v1741_v10, 0 }
  0x68   : >> { %v219_v27 = vshrl.u32 %v218_v25, 5  ;;  %v220_v28 = vand.u32 31, %v218_v25 }
  0x69   : >> { %v325_v32 = vsub.s32 32, %v324_v26  ;;  %v327_v34 = vshll.u32 %v1574_v33, %v324_v26  ;;  %v330_v36 = vshll.u32 %v1575_v35, %v324_v26  ;;  %v333_v46 = vshll.u32 %v1576_v40, %v324_v26 }
  0x6a   : >> { %v221_v37 = vsub.s32 32, %v220_v28  ;;  %v223_v38 = vshll.u32 %v1574_v33, %v220_v28  ;;  %v226_v39 = vshll.u32 %v1575_v35, %v220_v28  ;;  %v229_v41 = vshll.u32 %v1576_v40, %v220_v28 }
  0x6b   : >> { %v232_v43 = vshll.u32 %v1577_v42, %v220_v28  ;;  %v235_v45 = vshll.u32 %v1578_v44, %v220_v28  ;;  %vm238_vm5 = vcmp.lt.s32.totalorder %v219_v27, 1  ;;  %vm239_vm6 = vcmp.lt.s32.totalorder %v219_v27, 2 }
  0x6c   : >> { %v222_v47 = vshrl.u32 %v1574_v33, %v221_v37  ;;  %v224_v48 = vshrl.u32 %v1575_v35, %v221_v37  ;;  %v227_v49 = vshrl.u32 %v1576_v40, %v221_v37  ;;  %v230_v50 = vshrl.u32 %v1577_v42, %v221_v37 }
  0x6d   : >> { %v233_v51 = vshrl.u32 %v1578_v44, %v221_v37  ;;  %v236_v53 = vshrl.u32 %v1579_v52, %v221_v37  ;;  %vm240_vm7 = vcmp.lt.s32.totalorder %v219_v27, 3  ;;  %vm241_vm8 = vcmp.lt.s32.totalorder %v219_v27, 4 }
  0x6e   : >> { %v225_v54 = vor.u32 %v224_v48, %v223_v38  ;;  %v228_v55 = vor.u32 %v227_v49, %v226_v39  ;;  %v231_v56 = vor.u32 %v230_v50, %v229_v41  ;;  %v328_v59 = vshrl.u32 %v1575_v35, %v325_v32 }
  0x6f   : >> { %v234_v57 = vor.u32 %v233_v51, %v232_v43  ;;  %v237_v58 = vor.u32 %v236_v53, %v235_v45  ;;  %v331_v60 = vshrl.u32 %v1576_v40, %v325_v32  ;;  %v326_v4 = vshrl.u32 %v1574_v33, %v325_v32 }
  0x70   : >> { %v242_v61 = vsel %vm238_vm5, %v222_v47, %v225_v54  ;;  %v243_v62 = vsel %vm241_vm8, %v231_v56, 2102212464  ;;  %v246_v63 = vsel %vm238_vm5, %v225_v54, %v228_v55  ;;  %v250_v0 = vsel %vm238_vm5, %v228_v55, %v231_v56 }
  0x71   : >> { %v244_v1 = vsel %vm240_vm7, %v228_v55, %v243_v62  ;;  %v247_v2 = vsel %vm241_vm8, %v234_v57, 920167782  ;;  %v251_v3 = vsel %vm241_vm8, %v237_v58, 1326507024  ;;  %v329_v8 = vor.u32 %v328_v59, %v327_v34 }
  0x72   : >> { %v245_v5 = vsel %vm239_vm6, %v242_v61, %v244_v1  ;;  %v248_v6 = vsel %vm240_vm7, %v231_v56, %v247_v2  ;;  %v252_v7 = vsel %vm240_vm7, %v234_v57, %v251_v3  ;;  %v332_v14 = vor.u32 %v331_v60, %v330_v36 }
  0x73   : >> { %v249_v11 = vsel %vm239_vm6, %v246_v63, %v248_v6  ;;  %v253_v13 = vsel %vm239_vm6, %v250_v0, %v252_v7  ;;  %v334_v15 = vshrl.u32 %v1577_v42, %v325_v32  ;;  %v336_v22 = vshll.u32 %v1577_v42, %v324_v26 }
  0x74   : >> { %v1768_v16 = vmul.u32.u64.low %v1753_v29, %v253_v13  ;;  %v1769_v18 = vmul.u32.u64.high %v1753_v29, %v253_v13, %v1768_v16  ;;  %v1772_v19 = vmul.u32.u64.low %v1753_v29, %v249_v11  ;;  %v1773_v20 = vmul.u32.u64.high %v1753_v29, %v249_v11, %v1772_v19 }
  0x75   : >> { %v335_v21 = vor.u32 %v334_v15, %v333_v46  ;;  %v337_v23 = vshrl.u32 %v1578_v44, %v325_v32  ;;  %v339_v24 = vshll.u32 %v1578_v44, %v324_v26  ;;  %v261_v25 = vmul.u32 %v1753_v29, %v245_v5 }
  0x76   : >> { %v340_v28 = vshrl.u32 %v1579_v52, %v325_v32  ;;  %vm342_vm9 = vcmp.lt.s32.totalorder %v1756_v31, 1  ;;  %v358_v27 = vshll.u32 %v318_v30, 8  ;;  %vm343_vm10 = vcmp.lt.s32.totalorder %v1756_v31, 2 }
  0x77   : >> { %v338_v33 = vor.u32 %v337_v23, %v336_v22  ;;  %vm344_vm11 = vcmp.lt.s32.totalorder %v1756_v31, 3  ;;  %vm345_vm12 = vcmp.lt.s32.totalorder %v1756_v31, 4  ;;  %vm263_vm13 = vc.u32 %v1769_v18, %v1772_v19 }
  0x78   : >> { %v264_v34 = vadd.s32 1, %v1773_v20  ;;  %v341_v35 = vor.u32 %v340_v28, %v339_v24  ;;  %v350_v36 = vsel %vm342_vm9, %v329_v8, %v332_v14  ;;  %v346_v26 = vsel %vm342_vm9, %v326_v4, %v329_v8 }
  0x79   : >> { %v347_v37 = vsel %vm345_vm12, %v335_v21, 2102212464  ;;  %v351_v29 = vsel %vm345_vm12, %v338_v33, 920167782  ;;  %v354_v32 = vsel %vm342_vm9, %v332_v14, %v335_v21  ;;  %v262_v1 = vadd.s32 %v1772_v19, %v1769_v18 }
  0x7a   : >> { %v265_v38 = vsel %vm263_vm13, %v264_v34, %v1773_v20  ;;  %v348_v30 = vsel %vm344_vm11, %v332_v14, %v347_v37  ;;  %v352_v39 = vsel %vm344_vm11, %v335_v21, %v351_v29  ;;  %v355_v40 = vsel %vm345_vm12, %v341_v35, 1326507024 }
  0x7b   : >> { %v266_v41 = vadd.s32 %v265_v38, %v261_v25  ;;  %v353_v42 = vsel %vm343_vm10, %v350_v36, %v352_v39  ;;  %v356_v43 = vsel %vm344_vm11, %v338_v33, %v355_v40  ;;  %v349_v44 = vsel %vm343_vm10, %v346_v26, %v348_v30 }
  0x7c   : >> { %v357_v45 = vsel %vm343_vm10, %v354_v32, %v356_v43  ;;  %v1795_v46 = vmul.u32.u64.low %v358_v27, %v353_v42  ;;  %v1796_v47 = vmul.u32.u64.high %v358_v27, %v353_v42, %v1795_v46  ;;  %v365_v52 = vmul.u32 %v358_v27, %v349_v44 }
  0x7d   : >> { %v267_v48 = vadd.s32 536870912, %v266_v41  ;;  %v1798_v49 = vmul.u32.u64.low %v358_v27, %v357_v45  ;;  %v1799_v50 = vmul.u32.u64.high %v358_v27, %v357_v45, %v1798_v49  ;;  %vm207_vm5 = vcmp.le.f32.partialorder %v206_v12, 0.7853982 }
  0x7e   : >> { %v368_v53 = vadd.s32 1, %v1796_v47  ;;  %vm312_vm6 = vcmp.lt.s32.totalorder %v1739_v9, 0  ;;  %vm311_vm7 = vcmp.le.f32.partialorder %v310_v17, 0.7853982 }
  0x7f   : >> { %v268_v51 = vshrl.u32 %v267_v48, 30  ;;  %vm367_vm14 = vc.u32 %v1799_v50, %v1795_v46  ;;  %v366_v22 = vadd.s32 %v1795_v46, %v1799_v50 }
  0x80   : >> { %v369_v55 = vsel %vm367_vm14, %v368_v53, %v1796_v47  ;;  %vm298_vm14 = vweird.f32 %v1741_v10 }
  0x81   : >> { %v269_v54 = vshll.u32 %v268_v51, 30  ;;  %v370_v57 = vadd.s32 %v369_v55, %v365_v52  ;;  %v292_v18 = vsub.s32 4, %v268_v51 }
  0x83   : >> { %v270_v56 = vsub.s32 %v266_v41, %v269_v54  ;;  %v371_v58 = vadd.s32 536870912, %v370_v57  ;;  %v293_v36 = vsel %vm208_vm4, %v292_v18, %v268_v51 }
  0x84   : >> { %v295_v38 = vsel %vm207_vm5, 0, %v293_v36 }
  0x85   : >> { %v272_v31 = vsub.s32 0, %v270_v56  ;;  %v372_v60 = vshrl.u32 %v371_v58, 30  ;;  %v299_v42 = vadd.s32 3, %v295_v38  ;;  %v507_v46 = vand.u32 3, %v295_v38 }
  0x87   : >> { %v1217_v59 = vmin.u32 %v272_v31, %v270_v56  ;;  %v373_v62 = vshll.u32 %v372_v60, 30  ;;  %v396_v41 = vsub.s32 4, %v372_v60  ;;  %v300_v45 = vand.u32 3, %v299_v42 }
  0x88   : >> { %vm512_vm9 = vcmp.eq.s32.totalorder %v507_v46, 2  ;;  %vm509_vm11 = vcmp.eq.s32.totalorder %v507_v46, 0  ;;  %vm508_vm13 = vcmp.lt.s32.totalorder %v507_v46, 2 }
  0x89   : >> { %v274_v61 = vclz %v1217_v59  ;;  %v374_v0 = vsub.s32 %v370_v57, %v373_v62  ;;  %v397_v44 = vsel %vm312_vm6, %v396_v41, %v372_v60  ;;  %vm305_vm8 = vcmp.eq.s32.totalorder %v300_v45, 2 }
  0x8a   : >> { %v399_v49 = vsel %vm311_vm7, 0, %v397_v44  ;;  %vm302_vm10 = vcmp.eq.s32.totalorder %v300_v45, 0  ;;  %vm301_vm12 = vcmp.lt.s32.totalorder %v300_v45, 2 }
  0x8b   : >> { %v1218_v63 = vadd.s32 4294967294, %v274_v61  ;;  %v376_v3 = vsub.s32 0, %v374_v0  ;;  %v403_v53 = vadd.s32 3, %v399_v49  ;;  %v610_v60 = vand.u32 3, %v399_v49 }
  0x8d   : >> { %vm1219_vm15 = vcmp.lt.s32.totalorder %v1218_v63, 0  ;;  %v1221_v7 = vmin.u32 %v376_v3, %v374_v0  ;;  %v404_v58 = vand.u32 3, %v403_v53 }
  0x8e   : >> { %v277_v2 = vsel %vm1219_vm15, 0, %v1218_v63 }
  0x8f   : >> { %v278_v4 = vsub.s32 32, %v277_v2  ;;  %v279_v5 = vshll.u32 %v270_v56, %v277_v2  ;;  %v282_v6 = vsub.s32 4294967266, %v277_v2  ;;  %v378_v13 = vclz %v1221_v7 }
  0x90   : >> { %vm409_vm15 = vcmp.eq.s32.totalorder %v404_v58, 2 }
  0x91   : >> { %v280_v8 = vshrl.u32 %v262_v1, %v278_v4  ;;  %v283_v11 = vadd.s32 127, %v282_v6  ;;  %v1222_v16 = vadd.s32 4294967294, %v378_v13 }
  0x93   : >> { %v281_v14 = vor.u32 %v280_v8, %v279_v5  ;;  %v284_v15 = vshll.u32 %v283_v11, 23  ;;  %vm1223_vm3 = vcmp.lt.s32.totalorder %v1222_v16, 0 }
  0x94   : >> { %v381_v19 = vsel %vm1223_vm3, 0, %v1222_v16  ;;  %vm615_vm3 = vcmp.eq.s32.totalorder %v610_v60, 2 }
  0x95   : >> { %v285_v20 = vor.u32 4788187, %v284_v15  ;;  %v288_v21 = vcvt.s32.f32 %v281_v14  ;;  %v382_v24 = vsub.s32 32, %v381_v19  ;;  %v383_v25 = vshll.u32 %v374_v0, %v381_v19 }
  0x96   : >> { %v386_v28 = vsub.s32 4294967266, %v381_v19 }
  0x97   : >> { %v286_v23 = vand.u32 2147483647, %v285_v20  ;;  %v384_v33 = vshrl.u32 %v366_v22, %v382_v24 }
  0x98   : >> { %v387_v34 = vadd.s32 127, %v386_v28 }
  0x99   : >> { %v289_v27 = vmul.f32 %v288_v21, %v286_v23  ;;  %v385_v26 = vor.u32 %v384_v33, %v383_v25 }
  0x9a   : >> { %v388_v37 = vshll.u32 %v387_v34, 23 }
  0x9b   : >> { %v290_v35 = vxor.u32 2147483648, %v289_v27  ;;  %v392_v39 = vcvt.s32.f32 %v385_v26 }
  0x9c   : >> { %v389_v30 = vor.u32 4788187, %v388_v37 }
  0x9d   : >> { %v291_v29 = vsel %vm208_vm4, %v290_v35, %v289_v27  ;;  %vm406_vm4 = vcmp.eq.s32.totalorder %v404_v58, 0 }
  0x9e   : >> { %v294_v32 = vsel %vm207_vm5, %v1741_v10, %v291_v29  ;;  %v390_v40 = vand.u32 2147483647, %v389_v30  ;;  %vm612_vm5 = vcmp.eq.s32.totalorder %v610_v60, 0 }
  0x9f   : >> { %1392 = vcosq.f32 %v294_v32 }
  0xa0   : >> { %1394 = vsinq.f32 %v294_v32  ;;  %v393_v43 = vmul.f32 %v392_v39, %v390_v40 }
  0xa2   : >> { %v394_v12 = vxor.u32 2147483648, %v393_v43 }
  0xa4   : >> { %v395_v47 = vsel %vm312_vm6, %v394_v12, %v393_v43  ;;  %vm405_vm6 = vcmp.lt.s32.totalorder %v404_v58, 2 }
  0xa5   : >> { %v398_v48 = vsel %vm311_vm7, %v1739_v9, %v395_v47  ;;  %vm611_vm7 = vcmp.lt.s32.totalorder %v610_v60, 2 }
  0xa6   : >> { %1396 = vcosq.f32 %v398_v48 }
  0xa7   : >> { %1398 = vsinq.f32 %v398_v48 }
  0xa9   : >> { %v1393_v50 = vpop.eup %1392 }
  0xaa   : >> { %v1395_v51 = vpop.eup %1394  ;;  %v306_v52 = vxor.u32 2147483648, %v1393_v50 }
  0xab   : >> { %v303_v17 = vxor.u32 2147483648, %v1395_v51 }
  0xac   : >> { %v307_v54 = vsel %vm305_vm8, %v306_v52, %v1395_v51  ;;  %v514_v55 = vsel %vm512_vm9, %v306_v52, %v1395_v51  ;;  %vm402_vm8 = vweird.f32 %v1739_v9  ;;  %vm650_vm9 = vcmask 1041408  }
  0xad   : >> { %v304_v56 = vsel %vm302_vm10, %v1393_v50, %v303_v17  ;;  %v511_v57 = vsel %vm509_vm11, %v1393_v50, %v303_v17  ;;  %vm648_vm10 = vcmask 1046528   ;;  %vm652_vm11 = vcmask 1044480  }
  0xae   : >> { %v308_v31 = vsel %vm301_vm12, %v304_v56, %v307_v54  ;;  %v515_v59 = vsel %vm508_vm13, %v511_v57, %v514_v55 }
  0xaf   : >> { %v309_v61 = vsel %vm298_vm14, nan, %v308_v31  ;;  %v516_v62 = vsel %vm298_vm14, nan, %v515_v59 }
  0xb0   : >> { %v621_v63 = vrot.slane %v516_v62, 5  ;;  %v624_v0 = vrot.slane %v309_v61, 5  ;;  %v1397_v1 = vpop.eup %1396  ;;  %v626_v7 = vrot.slane %v516_v62, 2  ;;  %v629_v15 = vrot.slane %v309_v61, 2 }
  0xb1   : >> { %v1399_v3 = vpop.eup %1398  ;;  %v410_v10 = vxor.u32 2147483648, %v1397_v1  ;;  %v634_v21 = vrot.slane %v516_v62, 7 }
  0xb2   : >> { %v643_v2 = vsel %vm196_vm0, %v309_v61, %v621_v63  ;;  %v407_v5 = vxor.u32 2147483648, %v1399_v3  ;;  %vm646_vm0 = vcmask 1043456   ;;  %v645_v18 = vsel %vm200_vm1, %v624_v0, %v626_v7 }
  0xb3   : >> { %v644_v4 = vsel %vm198_vm2, %v643_v2, %v624_v0  ;;  %v411_v6 = vsel %vm409_vm15, %v410_v10, %v1399_v3  ;;  %v617_v8 = vsel %vm615_vm3, %v410_v10, %v1399_v3 }
  0xb4   : >> { %654 = vxpose.xlu0.b32.start [1/3] (short) %v644_v4, 128  ;;  %v408_v11 = vsel %vm406_vm4, %v1397_v1, %v407_v5  ;;  %v614_v13 = vsel %vm612_vm5, %v1397_v1, %v407_v5 }
  0xb5   : >> { %v412_v14 = vsel %vm405_vm6, %v408_v11, %v411_v6  ;;  %v618_v16 = vsel %vm611_vm7, %v614_v13, %v617_v8 }
  0xb6   : >> { %v413_v20 = vsel %vm402_vm8, nan, %v412_v14  ;;  %v619_v22 = vsel %vm402_vm8, nan, %v618_v16 }
  0xb7   : >> { %v630_v23 = vrot.slane %v413_v20, 2  ;;  %v635_v19 = vrot.slane %v619_v22, 7  ;;  %v639_v9 = vrot.slane %v413_v20, 7  ;;  %v641_v28 = vrot.slane %v619_v22, 4 }
  0xb9   : >> { %v631_v24 = vsel %vm198_vm2, %v629_v15, %v630_v23  ;;  %v636_v25 = vsel %vm200_vm1, %v634_v21, %v635_v19  ;;  %vm687_vm2 = vcmask 195584  }
  0xba   : >> { %v647_v27 = vsel %vm646_vm0, %v645_v18, %v631_v24  ;;  %v651_v33 = vsel %vm650_vm9, %v636_v25, %v639_v9 }
  0xbb   : >> { %v649_v34 = vsel %vm648_vm10, %v647_v27, %v634_v21  ;;  %v653_v35 = vsel %vm652_vm11, %v651_v33, %v641_v28 }
  0xbc   : >> { %655 = vxpose.xlu0.b32.cont [2/3] (short) %v649_v34, 128 }
  0xc0   : >> { %656 = vxpose.xlu0.b32.end [3/3] (short) %v653_v35, 128 }
 0x138   : >> { %v670_v36 = vpop.trf.xlu0 }
 0x139   : >> { %688 = vst.msk [vmem:[%s1824_s14] sm:$0xff] %vm687_vm2, %v670_v36 }
 0x13c   : >> { %v671_v26 = vpop.trf.xlu0 }
 0x13d   : >> { %689 = vst.msk [vmem:[%s1824_s14 + $0x8] sm:$0xff] %vm687_vm2, %v671_v26 }
 0x140   : >> { %v672_v37 = vpop.trf.xlu0 }
 0x141   : >> { %690 = vst.msk [vmem:[%s1824_s14 + $0x10] sm:$0xff] %vm687_vm2, %v672_v37 }
 0x144   : >> { %v673_v29 = vpop.trf.xlu0 }
 0x145   : >> { %691 = vst.msk [vmem:[%s1824_s14 + $0x18] sm:$0xff] %vm687_vm2, %v673_v29 }
 0x148   : >> { %v674_v32 = vpop.trf.xlu0 }
 0x149   : >> { %692 = vst.msk [vmem:[%s1824_s14 + $0x20] sm:$0xff] %vm687_vm2, %v674_v32 }
 0x14c   : >> { %v675_v38 = vpop.trf.xlu0 }
 0x14d   : >> { %693 = vst.msk [vmem:[%s1824_s14 + $0x28] sm:$0xff] %vm687_vm2, %v675_v38 }
 0x150   : >> { %v676_v30 = vpop.trf.xlu0 }
 0x151   : >> { %694 = vst.msk [vmem:[%s1824_s14 + $0x30] sm:$0xff] %vm687_vm2, %v676_v30 }
 0x154   : >> { %v677_v39 = vpop.trf.xlu0 }
 0x155   : >> { %695 = vst.msk [vmem:[%s1824_s14 + $0x38] sm:$0xff] %vm687_vm2, %v677_v39 }
 0x158   : >> { %v678_v40 = vpop.trf.xlu0 }
 0x159   : >> { %696 = vst.msk [vmem:[%s1824_s14 + $0x40] sm:$0xff] %vm687_vm2, %v678_v40 }
 0x15c   : >> { %v679_v41 = vpop.trf.xlu0 }
 0x15d   : >> { %697 = vst.msk [vmem:[%s1824_s14 + $0x48] sm:$0xff] %vm687_vm2, %v679_v41 }
 0x160   : >> { %v680_v42 = vpop.trf.xlu0 }
 0x161   : >> { %698 = vst.msk [vmem:[%s1824_s14 + $0x50] sm:$0xff] %vm687_vm2, %v680_v42 }
 0x164   : >> { %v681_v43 = vpop.trf.xlu0 }
 0x165   : >> { %699 = vst.msk [vmem:[%s1824_s14 + $0x58] sm:$0xff] %vm687_vm2, %v681_v43 }
 0x168   : >> { %v682_v12 = vpop.trf.xlu0 }
 0x169   : >> { %700 = vst.msk [vmem:[%s1824_s14 + $0x60] sm:$0xff] %vm687_vm2, %v682_v12 }
 0x16c   : >> { %v683_v44 = vpop.trf.xlu0 }
 0x16d   : >> { %701 = vst.msk [vmem:[%s1824_s14 + $0x68] sm:$0xff] %vm687_vm2, %v683_v44 }
 0x16f   : > { %181 = sbr.rel (!%p179_p8) target bundleno = 83 (0x53), region = 142 }
 0x170   : >> { %v684_v45 = vpop.trf.xlu0 }
 0x171   : >> { %702 = vst.msk [vmem:[%s1824_s14 + $0x70] sm:$0xff] %vm687_vm2, %v684_v45 }
 0x174   : >> { %v685_v46 = vpop.trf.xlu0 }
 0x175   : >> { %703 = vst.msk [vmem:[%s1824_s14 + $0x78] sm:$0xff] %vm687_vm2, %v685_v46 }
 0x176   : > { %710 = sbr.rel (!%p1669_p10) target bundleno = 453 (0x1c5), region = 47  ;;  %s1233_s24 = sshll.u32 (%p1669_p10), %s1614_s13, 6 }
 0x177   : > { %s1250_s25 = sshll.u32 (%p1669_p10), %s1614_s13, 9  ;;  %s712_s26 = ssub.s32 (%p1669_p10), 250, %s1233_s24 }
 0x178   : > { %s1868_s29 = scalar_lea.vmem (%p1669_p10), %s2072_s2, %s1250_s25   ;;  %p713_p6 = scmp.lt.s32.totalorder (%p1669_p10), %s712_s26, 64 }
 0x17d   : > { %s2096_s26 = smov (!%p713_p6, %s712_s26), 64 }
 0x17e   : > { %s1234_s30 = sshll.u32 %s2096_s26, 7 }
 0x17f   : > { %p1237_p9 = scmp.eq.s32.totalorder %s1234_s30, 0 }
 0x180   : > { %s1874_s7 = sshrl.u32 (!%p1237_p9), %s2096_s26, 6 }
 0x181   : > { %721 = sbr.rel (%p1237_p9) target bundleno = 453 (0x1c5), region = 51  ;;  %p1238_p10 = scmp.le.s32.totalorder (!%p1237_p9), %s1874_s7, 0 }
 0x188   : > { %1147 = sbr.rel (%p1238_p10) target bundleno = 432 (0x1b0), region = 147  ;;  %s2086_s13 = smov (!%p1238_p10), %s1868_s29 }
 0x189   : > { %s2087_s3 = smov (!%p1238_p10), %s1725_s21  ;;  %s1883_s4 = smov (!%p1238_p10), 0  }
 0x18a   : > { %s1885_s5 = smov (!%p1238_p10), 0  }
 0x18f LB: >> { %v909_v47 = vld [vmem:[%s1544_s3] sm:$0xff]  ;;  %v911_v48 = vld [vmem:[%s1544_s3 + $0x8] sm:$0xff]  ;;  %v913_v49 = vld [vmem:[%s1544_s3 + $0x10] sm:$0xff]  ;;  %s1037_s8 = sadd.s32 1, %s1548_s4  ;;  %s903_s5 = sadd.s32 1, %s1552_s5   ;;  %s1552_s5 = sphi %s1885_s5, %s903_s5   ;;  %s1548_s4 = sphi %s1883_s4, %s2090_s4   ;;  %s1544_s3 = sphi %s2087_s3, %s2089_s3   ;;  %s1540_s13 = sphi %s2086_s13, %s2088_s13  }
 0x190   : >> { %910 = vst [vmem:[%s1540_s13] sm:$0xff] %v909_v47  ;;  %912 = vst [vmem:[%s1540_s13 + $0x8] sm:$0xff] %v911_v48  ;;  %v915_v50 = vld [vmem:[%s1544_s3 + $0x18] sm:$0xff]  ;;  %v917_v51 = vld [vmem:[%s1544_s3 + $0x20] sm:$0xff]  ;;  %p1038_p11 = scmp.ge.s32.totalorder %s1037_s8, %s1874_s7  ;;  %p902_p12 = scmp.ge.s32.totalorder %s903_s5, %s1874_s7 }
 0x191   : >> { %914 = vst [vmem:[%s1540_s13 + $0x10] sm:$0xff] %v913_v49  ;;  %v919_v52 = vld [vmem:[%s1544_s3 + $0x28] sm:$0xff]  ;;  %916 = vst [vmem:[%s1540_s13 + $0x18] sm:$0xff] %v915_v50  ;;  %v921_v53 = vld [vmem:[%s1544_s3 + $0x30] sm:$0xff] }
 0x192   : >> { %918 = vst [vmem:[%s1540_s13 + $0x20] sm:$0xff] %v917_v51  ;;  %920 = vst [vmem:[%s1540_s13 + $0x28] sm:$0xff] %v919_v52  ;;  %v923_v17 = vld [vmem:[%s1544_s3 + $0x38] sm:$0xff]  ;;  %v925_v54 = vld [vmem:[%s1544_s3 + $0x40] sm:$0xff]  ;;  %s2098_s8 = smov (%p1038_p11, %s1037_s8), 0 }
 0x193   : >> { %922 = vst [vmem:[%s1540_s13 + $0x30] sm:$0xff] %v921_v53  ;;  %924 = vst [vmem:[%s1540_s13 + $0x38] sm:$0xff] %v923_v17  ;;  %v927_v55 = vld [vmem:[%s1544_s3 + $0x48] sm:$0xff]  ;;  %v929_v56 = vld [vmem:[%s1544_s3 + $0x50] sm:$0xff]  ;;  %s1239_s9 = sshll.u32 %s2098_s8, 9  ;;  %s2090_s4 = smov %s2098_s8 }
 0x194   : >> { %926 = vst [vmem:[%s1540_s13 + $0x40] sm:$0xff] %v925_v54  ;;  %v931_v57 = vld [vmem:[%s1544_s3 + $0x58] sm:$0xff]  ;;  %928 = vst [vmem:[%s1540_s13 + $0x48] sm:$0xff] %v927_v55  ;;  %v933_v31 = vld [vmem:[%s1544_s3 + $0x60] sm:$0xff]  ;;  %s1941_s16 = scalar_lea.vmem %s1725_s21, %s1239_s9 [#allocation6]   ;;  %s1944_s18 = scalar_lea.vmem %s1868_s29, %s1239_s9  }
 0x195   : >> { %930 = vst [vmem:[%s1540_s13 + $0x50] sm:$0xff] %v929_v56  ;;  %932 = vst [vmem:[%s1540_s13 + $0x58] sm:$0xff] %v931_v57  ;;  %v935_v58 = vld [vmem:[%s1544_s3 + $0x68] sm:$0xff]  ;;  %v937_v59 = vld [vmem:[%s1544_s3 + $0x70] sm:$0xff] }
 0x196   : >> { %934 = vst [vmem:[%s1540_s13 + $0x60] sm:$0xff] %v933_v31  ;;  %936 = vst [vmem:[%s1540_s13 + $0x68] sm:$0xff] %v935_v58  ;;  %v939_v60 = vld [vmem:[%s1544_s3 + $0x78] sm:$0xff]  ;;  %v941_v61 = vld [vmem:[%s1544_s3 + $0x80] sm:$0xff] }
 0x197   : >> { %938 = vst [vmem:[%s1540_s13 + $0x70] sm:$0xff] %v937_v59  ;;  %v943_v62 = vld [vmem:[%s1544_s3 + $0x88] sm:$0xff]  ;;  %940 = vst [vmem:[%s1540_s13 + $0x78] sm:$0xff] %v939_v60  ;;  %v945_v63 = vld [vmem:[%s1544_s3 + $0x90] sm:$0xff] }
 0x198   : >> { %942 = vst [vmem:[%s1540_s13 + $0x80] sm:$0xff] %v941_v61  ;;  %944 = vst [vmem:[%s1540_s13 + $0x88] sm:$0xff] %v943_v62  ;;  %v947_v0 = vld [vmem:[%s1544_s3 + $0x98] sm:$0xff]  ;;  %v949_v1 = vld [vmem:[%s1544_s3 + $0xa0] sm:$0xff] }
 0x199   : >> { %946 = vst [vmem:[%s1540_s13 + $0x90] sm:$0xff] %v945_v63  ;;  %948 = vst [vmem:[%s1540_s13 + $0x98] sm:$0xff] %v947_v0  ;;  %v951_v2 = vld [vmem:[%s1544_s3 + $0xa8] sm:$0xff]  ;;  %v953_v3 = vld [vmem:[%s1544_s3 + $0xb0] sm:$0xff] }
 0x19a   : >> { %950 = vst [vmem:[%s1540_s13 + $0xa0] sm:$0xff] %v949_v1  ;;  %v955_v10 = vld [vmem:[%s1544_s3 + $0xb8] sm:$0xff]  ;;  %952 = vst [vmem:[%s1540_s13 + $0xa8] sm:$0xff] %v951_v2  ;;  %v957_v4 = vld [vmem:[%s1544_s3 + $0xc0] sm:$0xff] }
 0x19b   : >> { %954 = vst [vmem:[%s1540_s13 + $0xb0] sm:$0xff] %v953_v3  ;;  %956 = vst [vmem:[%s1540_s13 + $0xb8] sm:$0xff] %v955_v10  ;;  %v959_v5 = vld [vmem:[%s1544_s3 + $0xc8] sm:$0xff]  ;;  %v961_v6 = vld [vmem:[%s1544_s3 + $0xd0] sm:$0xff] }
 0x19c   : >> { %958 = vst [vmem:[%s1540_s13 + $0xc0] sm:$0xff] %v957_v4  ;;  %960 = vst [vmem:[%s1540_s13 + $0xc8] sm:$0xff] %v959_v5  ;;  %v963_v7 = vld [vmem:[%s1544_s3 + $0xd8] sm:$0xff]  ;;  %v965_v8 = vld [vmem:[%s1544_s3 + $0xe0] sm:$0xff] }
 0x19d   : >> { %962 = vst [vmem:[%s1540_s13 + $0xd0] sm:$0xff] %v961_v6  ;;  %v967_v11 = vld [vmem:[%s1544_s3 + $0xe8] sm:$0xff]  ;;  %964 = vst [vmem:[%s1540_s13 + $0xd8] sm:$0xff] %v963_v7  ;;  %v969_v13 = vld [vmem:[%s1544_s3 + $0xf0] sm:$0xff] }
 0x19e   : >> { %966 = vst [vmem:[%s1540_s13 + $0xe0] sm:$0xff] %v965_v8  ;;  %968 = vst [vmem:[%s1540_s13 + $0xe8] sm:$0xff] %v967_v11  ;;  %v971_v14 = vld [vmem:[%s1544_s3 + $0xf8] sm:$0xff]  ;;  %v973_v15 = vld [vmem:[%s1544_s3 + $0x100] sm:$0xff] }
 0x19f   : >> { %970 = vst [vmem:[%s1540_s13 + $0xf0] sm:$0xff] %v969_v13  ;;  %972 = vst [vmem:[%s1540_s13 + $0xf8] sm:$0xff] %v971_v14  ;;  %v975_v16 = vld [vmem:[%s1544_s3 + $0x108] sm:$0xff]  ;;  %v977_v20 = vld [vmem:[%s1544_s3 + $0x110] sm:$0xff] }
 0x1a0   : >> { %974 = vst [vmem:[%s1540_s13 + $0x100] sm:$0xff] %v973_v15  ;;  %v979_v21 = vld [vmem:[%s1544_s3 + $0x118] sm:$0xff]  ;;  %976 = vst [vmem:[%s1540_s13 + $0x108] sm:$0xff] %v975_v16  ;;  %v981_v22 = vld [vmem:[%s1544_s3 + $0x120] sm:$0xff] }
 0x1a1   : >> { %978 = vst [vmem:[%s1540_s13 + $0x110] sm:$0xff] %v977_v20  ;;  %980 = vst [vmem:[%s1540_s13 + $0x118] sm:$0xff] %v979_v21  ;;  %v983_v23 = vld [vmem:[%s1544_s3 + $0x128] sm:$0xff]  ;;  %v985_v18 = vld [vmem:[%s1544_s3 + $0x130] sm:$0xff] }
 0x1a2   : >> { %982 = vst [vmem:[%s1540_s13 + $0x120] sm:$0xff] %v981_v22  ;;  %984 = vst [vmem:[%s1540_s13 + $0x128] sm:$0xff] %v983_v23  ;;  %v987_v19 = vld [vmem:[%s1544_s3 + $0x138] sm:$0xff]  ;;  %v989_v9 = vld [vmem:[%s1544_s3 + $0x140] sm:$0xff] }
 0x1a3   : >> { %986 = vst [vmem:[%s1540_s13 + $0x130] sm:$0xff] %v985_v18  ;;  %v991_v24 = vld [vmem:[%s1544_s3 + $0x148] sm:$0xff]  ;;  %988 = vst [vmem:[%s1540_s13 + $0x138] sm:$0xff] %v987_v19  ;;  %v993_v25 = vld [vmem:[%s1544_s3 + $0x150] sm:$0xff] }
 0x1a4   : >> { %990 = vst [vmem:[%s1540_s13 + $0x140] sm:$0xff] %v989_v9  ;;  %992 = vst [vmem:[%s1540_s13 + $0x148] sm:$0xff] %v991_v24  ;;  %v995_v28 = vld [vmem:[%s1544_s3 + $0x158] sm:$0xff]  ;;  %v997_v27 = vld [vmem:[%s1544_s3 + $0x160] sm:$0xff] }
 0x1a5   : >> { %994 = vst [vmem:[%s1540_s13 + $0x150] sm:$0xff] %v993_v25  ;;  %996 = vst [vmem:[%s1540_s13 + $0x158] sm:$0xff] %v995_v28  ;;  %v999_v33 = vld [vmem:[%s1544_s3 + $0x168] sm:$0xff]  ;;  %v1001_v34 = vld [vmem:[%s1544_s3 + $0x170] sm:$0xff] }
 0x1a6   : >> { %998 = vst [vmem:[%s1540_s13 + $0x160] sm:$0xff] %v997_v27  ;;  %v1003_v35 = vld [vmem:[%s1544_s3 + $0x178] sm:$0xff]  ;;  %1000 = vst [vmem:[%s1540_s13 + $0x168] sm:$0xff] %v999_v33  ;;  %v1005_v36 = vld [vmem:[%s1544_s3 + $0x180] sm:$0xff] }
 0x1a7   : >> { %1002 = vst [vmem:[%s1540_s13 + $0x170] sm:$0xff] %v1001_v34  ;;  %1004 = vst [vmem:[%s1540_s13 + $0x178] sm:$0xff] %v1003_v35  ;;  %v1007_v26 = vld [vmem:[%s1544_s3 + $0x188] sm:$0xff]  ;;  %v1009_v37 = vld [vmem:[%s1544_s3 + $0x190] sm:$0xff] }
 0x1a8   : >> { %1006 = vst [vmem:[%s1540_s13 + $0x180] sm:$0xff] %v1005_v36  ;;  %1008 = vst [vmem:[%s1540_s13 + $0x188] sm:$0xff] %v1007_v26  ;;  %v1011_v29 = vld [vmem:[%s1544_s3 + $0x198] sm:$0xff]  ;;  %v1013_v32 = vld [vmem:[%s1544_s3 + $0x1a0] sm:$0xff] }
 0x1a9   : >> { %1010 = vst [vmem:[%s1540_s13 + $0x190] sm:$0xff] %v1009_v37  ;;  %v1015_v38 = vld [vmem:[%s1544_s3 + $0x1a8] sm:$0xff]  ;;  %1012 = vst [vmem:[%s1540_s13 + $0x198] sm:$0xff] %v1011_v29  ;;  %v1017_v30 = vld [vmem:[%s1544_s3 + $0x1b0] sm:$0xff]  ;;  %905 = sbr.rel (!%p902_p12) target bundleno = 399 (0x18f), region = 153 }
 0x1aa   : >> { %1014 = vst [vmem:[%s1540_s13 + $0x1a0] sm:$0xff] %v1013_v32  ;;  %1016 = vst [vmem:[%s1540_s13 + $0x1a8] sm:$0xff] %v1015_v38  ;;  %v1019_v39 = vld [vmem:[%s1544_s3 + $0x1b8] sm:$0xff]  ;;  %v1021_v40 = vld [vmem:[%s1544_s3 + $0x1c0] sm:$0xff] }
 0x1ab   : >> { %1018 = vst [vmem:[%s1540_s13 + $0x1b0] sm:$0xff] %v1017_v30  ;;  %1020 = vst [vmem:[%s1540_s13 + $0x1b8] sm:$0xff] %v1019_v39  ;;  %v1023_v41 = vld [vmem:[%s1544_s3 + $0x1c8] sm:$0xff]  ;;  %v1025_v42 = vld [vmem:[%s1544_s3 + $0x1d0] sm:$0xff] }
 0x1ac   : >> { %1022 = vst [vmem:[%s1540_s13 + $0x1c0] sm:$0xff] %v1021_v40  ;;  %v1027_v43 = vld [vmem:[%s1544_s3 + $0x1d8] sm:$0xff]  ;;  %1024 = vst [vmem:[%s1540_s13 + $0x1c8] sm:$0xff] %v1023_v41  ;;  %v1029_v12 = vld [vmem:[%s1544_s3 + $0x1e0] sm:$0xff] }
 0x1ad   : >> { %1026 = vst [vmem:[%s1540_s13 + $0x1d0] sm:$0xff] %v1025_v42  ;;  %1028 = vst [vmem:[%s1540_s13 + $0x1d8] sm:$0xff] %v1027_v43  ;;  %v1031_v44 = vld [vmem:[%s1544_s3 + $0x1e8] sm:$0xff]  ;;  %v1033_v45 = vld [vmem:[%s1544_s3 + $0x1f0] sm:$0xff] }
 0x1ae   : >> { %1030 = vst [vmem:[%s1540_s13 + $0x1e0] sm:$0xff] %v1029_v12  ;;  %1032 = vst [vmem:[%s1540_s13 + $0x1e8] sm:$0xff] %v1031_v44  ;;  %v1035_v46 = vld [vmem:[%s1544_s3 + $0x1f8] sm:$0xff]  ;;  %s2089_s3 = smov %s1941_s16 }
 0x1af   : >> { %1034 = vst [vmem:[%s1540_s13 + $0x1f0] sm:$0xff] %v1033_v45  ;;  %1036 = vst [vmem:[%s1540_s13 + $0x1f8] sm:$0xff] %v1035_v46  ;;  %s2088_s13 = smov %s1944_s18 }
 0x1b0 PF: > { %s2049_s15 = sand.u32 63, %s2096_s26   ;;  %s1251_s17 = sshll.u32 %s1874_s7, 9 }
 0x1b1   : > { %s1048_s20 = scalar_lea.vmem %s1725_s21, %s1251_s17 [#allocation6]   ;;  %s1050_s22 = scalar_lea.vmem %s1868_s29, %s1251_s17  }
 0x1b2   : > { %p1244_p0 = scmp.le.s32.totalorder %s2049_s15, 0 }
 0x1b3   : > { %s1554_s23 = smov (!%p1244_p0), %s1050_s22   ;;  %s1558_s12 = smov (!%p1244_p0), %s1048_s20  }
 0x1b4   : > { %1161 = sbr.rel (%p1244_p0) target bundleno = 453 (0x1c5), region = 158  ;;  %s1562_s14 = smov (!%p1244_p0), 0  }
 0x1b5   : > { %s1566_s24 = smov (!%p1244_p0), 0  }
 0x1bb LB: >> { %v1060_v47 = vld [vmem:[%s1560_s12] sm:$0xff]  ;;  %s1062_s25 = sadd.s32 1, %s1564_s14  ;;  %s1054_s24 = sadd.s32 1, %s1568_s24   ;;  %s1568_s24 = sphi %s1566_s24, %s1054_s24   ;;  %s1564_s14 = sphi %s1562_s14, %s1563_s14   ;;  %s1560_s12 = sphi %s1558_s12, %s1067_s12   ;;  %s1556_s23 = sphi %s1554_s23, %s1068_s23  }
 0x1bc   : >> { %1061 = vst [vmem:[%s1556_s23] sm:$0xff] %v1060_v47  ;;  %p1063_p4 = scmp.ge.s32.totalorder %s1062_s25, %s2049_s15  ;;  %p1053_p7 = scmp.ge.s32.totalorder %s1054_s24, %s2049_s15 }
 0x1be   : >> { %s2100_s25 = smov (%p1063_p4, %s1062_s25), 0  ;;  %1056 = sbr.rel (!%p1053_p7) target bundleno = 443 (0x1bb), region = 164 }
 0x1bf   : >> { %s1245_s21 = sshll.u32 %s2100_s25, 3  ;;  %s1563_s14 = smov %s2100_s25  }
 0x1c0   : >> { %s1067_s12 = scalar_lea.vmem %s1048_s20, %s1245_s21 [#allocation6]   ;;  %s1068_s23 = scalar_lea.vmem %s1050_s22, %s1245_s21  }
 0x1c5 PF: > { %p13_p1 = scmp.ge.s32.totalorder %s1640_s19, 6   ;;  %s2091_s9 = smov %s1524_s10 }
 0x1c6   : > { %s2092_s10 = smov %s1528_s11  ;;  %s2093_s11 = smov %s1665_s6 }
 0x1c7   : > { %s2094_s12 = smov %s1640_s19  ;;  %15 = sbr.rel (!%p13_p1) target bundleno = 4 (0x4), region = 175 }
 0x1ce   :  { %1084 = vsyncpa [#allocation3], 1 }
 0x1cf   :  { %1086 = vsyncpa [#allocation3 + $0x1], 1 }
 0x1d0   :  { %1087 = vsyncpa [#allocation5], 1 }
 0x1d1   :  { %1089 = vsyncpa [#allocation5 + $0x1], 1 }

</bundles_post_ra>
